<compile_context>
chip_gen: v7x
topology: tpu7x:2x2x1
jax: 0.10.0
libtpu: 0.0.40
codegen_flags: <defaults>
</compile_context>

<pallas_src>
import functools

import jax
import jax.numpy as jnp
from jax.experimental import pallas as pl
from jax.experimental.pallas import tpu as pltpu


def _vmem_capacity_bytes():
    """Physical VMEM per core (trace-time query, conservative fallback)."""
    try:
        info = pltpu.get_tpu_info()
        cap = getattr(info, "vmem_capacity_bytes", None)
        if cap:
            return int(cap)
    except Exception:
        pass
    return 64 * 1024 * 1024  # v7x: the smallest of v5e / v6e / v7x


# ---------------------------------------------------------------------------
# Fused path: pool -> SE MLP -> blend, one grid step per batch element.
# ---------------------------------------------------------------------------
def _fused_kernel(x1_ref, x2_ref, w1t_ref, w2_ref, o_ref, *, inv_hw, c):
    x1 = x1_ref[...].astype(jnp.float32)            # (1, C, HW)
    x2 = x2_ref[...].astype(jnp.float32)

    # Global average pool of (x1 + x2): single cross-lane reduction per slab.
    pooled = jnp.sum(x1 + x2, axis=-1, keepdims=True) * inv_hw      # (1, C, 1)
    pooled = pooled.reshape(c, 1)                                   # (C, 1)

    # Tiny SE MLP on the VPU/XLU.  Weights are laid out so no in-kernel
    # transpose is needed: w1t = w1.T and w2 are both (C, C//16).
    w1t = w1t_ref[...].astype(jnp.float32)                          # (C, C//16)
    w2 = w2_ref[...].astype(jnp.float32)                            # (C, C//16)
    h = jnp.maximum(jnp.sum(w1t * pooled, axis=0, keepdims=True), 0.0)  # (1, C//16)
    logit = jnp.sum(w2 * h, axis=-1, keepdims=True)                 # (C, 1)
    gate = 1.0 / (1.0 + jnp.exp(-logit))                            # sigmoid
    gate = gate.reshape(1, c, 1)                                    # bcast over HW

    # out = x1*g + x2*(1-g) == x2 + (x1 - x2)*g   (computed in f32, cast once)
    o_ref[...] = (x2 + (x1 - x2) * gate).astype(o_ref.dtype)


# ---------------------------------------------------------------------------
# Fallback path (huge H*W only): channel-tiled two-pass, full HW per block.
# ---------------------------------------------------------------------------
def _pool_kernel(x1_ref, x2_ref, mean_ref, *, inv_hw):
    s = x1_ref[...].astype(jnp.float32) + x2_ref[...].astype(jnp.float32)  # (1,Ct,HW)
    mean_ref[...] = jnp.sum(s, axis=-1, keepdims=True) * inv_hw            # (1,Ct,1)


def _blend_kernel(x1_ref, x2_ref, gate_ref, o_ref):
    x1 = x1_ref[...].astype(jnp.float32)            # (1, Ct, HW)
    x2 = x2_ref[...].astype(jnp.float32)
    gate = gate_ref[...]                            # (1, Ct, 1) f32
    o_ref[...] = (x2 + (x1 - x2) * gate).astype(o_ref.dtype)


def _choose_channel_tile(c, max_rows):
    """Largest channel tile that fits; prefer divisors of C, multiples of 8."""
    if c <= max_rows:
        return c
    ct = max((max_rows // 8) * 8, 8)
    for cand in range(ct, 7, -8):
        if c % cand == 0:
            return cand
    return ct  # non-dividing tile: Pallas handles the ragged last block


def adaptive_feature_fusion(x1, x2, w1, w2, *, force_two_pass=False,
                            _max_channel_tile=None):
    """x1, x2: (B, C, H, W).  w1: (C//16, C), w2: (C, C//16) (torch Linear layout)."""
    B, C, H, W = x1.shape
    HW = H * W
    C16 = w1.shape[0]
    itemsize = jnp.dtype(x1.dtype).itemsize
    inv_hw = 1.0 / float(HW)

    # NCHW -> (B, C, HW): free reshape (no transpose); HW sits on the lane axis.
    x1f = x1.reshape(B, C, HW)
    x2f = x2.reshape(B, C, HW)

    cap = _vmem_capacity_bytes()
    vmem_limit = int(cap * 0.75)     # leave headroom for compiler scratch
    budget = int(cap * 0.60)         # sizing budget (double-buffering + temps)

    # Fused-path estimate: (2 inputs + 1 output) double-buffered slabs plus the
    # f32 elementwise temporaries materialized inside the kernel body.
    slab = C * HW * itemsize
    fused_bytes = 6 * slab + 3 * C * HW * 4 + 4 * C * C16 * 4

    feat_spec = pl.BlockSpec((1, C, HW), lambda b: (b, 0, 0))
    w_spec = pl.BlockSpec((C, C16), lambda b: (0, 0))

    if fused_bytes <= budget and not force_two_pass:
        out = pl.pallas_call(
            functools.partial(_fused_kernel, inv_hw=inv_hw, c=C),
            out_shape=jax.ShapeDtypeStruct((B, C, HW), x1.dtype),
            grid=(B,),
            in_specs=[feat_spec, feat_spec, w_spec, w_spec],
            out_specs=feat_spec,
            compiler_params=pltpu.CompilerParams(
                dimension_semantics=("parallel",),
                vmem_limit_bytes=vmem_limit,
            ),
        )(x1f, x2f, w1.T, w2)
        return out.reshape(B, C, H, W)

    # ---- Fallback: channel-tiled two-pass ------------------------------------
    # Bytes in flight per channel row (blend pass is the larger of the two):
    # 3 arrays x 2 pipeline buffers x HW x itemsize, plus ~2 f32 temporaries.
    per_row = 6 * HW * itemsize + 2 * HW * 4
    max_rows = max(budget // per_row, 8)
    ct = _max_channel_tile if _max_channel_tile is not None else _choose_channel_tile(C, max_rows)
    n_ct = pl.cdiv(C, ct)

    tile_spec = pl.BlockSpec((1, ct, HW), lambda b, j: (b, j, 0))
    col_spec = pl.BlockSpec((1, ct, 1), lambda b, j: (b, j, 0))
    cparams = pltpu.CompilerParams(
        dimension_semantics=("parallel", "parallel"),
        vmem_limit_bytes=vmem_limit,
    )

    pooled = pl.pallas_call(
        functools.partial(_pool_kernel, inv_hw=inv_hw),
        out_shape=jax.ShapeDtypeStruct((B, C, 1), jnp.float32),
        grid=(B, n_ct),
        in_specs=[tile_spec, tile_spec],
        out_specs=col_spec,
        compiler_params=cparams,
    )(x1f, x2f)

    # Tiny SE MLP, batched over B, in plain XLA (negligible next to the slabs).
    p = pooled[:, :, 0]                                               # (B, C)
    h = jnp.maximum(p @ w1.T.astype(jnp.float32), 0.0)                # (B, C//16)
    gate = jax.nn.sigmoid(h @ w2.T.astype(jnp.float32))[:, :, None]   # (B, C, 1)

    out = pl.pallas_call(
        _blend_kernel,
        out_shape=jax.ShapeDtypeStruct((B, C, HW), x1.dtype),
        grid=(B, n_ct),
        in_specs=[tile_spec, tile_spec, col_spec],
        out_specs=tile_spec,
        compiler_params=cparams,
    )(x1f, x2f, gate)
    return out.reshape(B, C, H, W)


def _reference(x1, x2, w1, w2):
    x = x1 + x2
    y = jnp.mean(x, axis=(2, 3))                      # (B, C)
    h = jnp.maximum(y @ w1.T, 0.0)                    # (B, C//16)
    g = jax.nn.sigmoid(h @ w2.T)                      # (B, C)
    g = g[:, :, None, None]
    return x1 * g + x2 * (1.0 - g)


if __name__ == "__main__":
    key = jax.random.PRNGKey(0)
    k1, k2, k3, k4 = jax.random.split(key, 4)

    B, C, H, W = 2, 32, 16, 16     # channels must be >= 16 (channels // 16 bottleneck)
    x1 = jax.random.normal(k1, (B, C, H, W), dtype=jnp.float32)
    x2 = jax.random.normal(k2, (B, C, H, W), dtype=jnp.float32)
    # torch nn.Linear weight layout: (out_features, in_features), no bias.
    w1 = jax.random.normal(k3, (C // 16, C), dtype=jnp.float32) * 0.1
    w2 = jax.random.normal(k4, (C, C // 16), dtype=jnp.float32) * 0.1

    ref = _reference(x1, x2, w1, w2)

    # Primary (fused single-pass) path.
    out = jax.block_until_ready(adaptive_feature_fusion(x1, x2, w1, w2))
    assert out.shape == (B, C, H, W)
    assert jnp.allclose(out, ref, atol=1e-5, rtol=1e-5), "fused path mismatch"

    # Channel-tiled two-pass fallback (exercised explicitly with small tiles).
    out2 = jax.block_until_ready(
        adaptive_feature_fusion(x1, x2, w1, w2, force_two_pass=True,
                                _max_channel_tile=8)
    )
    assert jnp.allclose(out2, ref, atol=1e-5, rtol=1e-5), "two-pass fallback mismatch"

    print("KERNEL_OK")
</pallas_src>

<mosaic_0001>
module attributes {stable_mosaic.version = 11 : i64} {
  func.func @_fused_kernel(%arg0: i32, %arg1: memref<1x32x256xf32, #tpu.memory_space<vmem>>, %arg2: memref<1x32x256xf32, #tpu.memory_space<vmem>>, %arg3: memref<32x2xf32, #tpu.memory_space<vmem>>, %arg4: memref<32x2xf32, #tpu.memory_space<vmem>>, %arg5: memref<1x32x256xf32, #tpu.memory_space<vmem>>) attributes {dimension_semantics = [#tpu.dimension_semantics<parallel>], iteration_bounds = array<i64: 2>, scalar_prefetch = 0 : i64, scratch_operands = 0 : i64, tpu.core_type = #tpu.core_type<tc>, window_params = [{transform_indices = @transform_0, window_bounds = array<i64: 1, 32, 256>}, {transform_indices = @transform_1, window_bounds = array<i64: 1, 32, 256>}, {pipeline_mode = #tpu.pipeline_mode<synchronous>, transform_indices = @transform_2, window_bounds = array<i64: 32, 2>}, {pipeline_mode = #tpu.pipeline_mode<synchronous>, transform_indices = @transform_3, window_bounds = array<i64: 32, 2>}, {transform_indices = @transform_4, window_bounds = array<i64: 1, 32, 256>}]} {
    %c0 = arith.constant 0 : index
    %c0_0 = arith.constant 0 : index
    %c0_1 = arith.constant 0 : index
    %0 = vector.load %arg1[%c0, %c0_0, %c0_1] : memref<1x32x256xf32, #tpu.memory_space<vmem>>, vector<1x32x256xf32>
    %c0_2 = arith.constant 0 : index
    %c0_3 = arith.constant 0 : index
    %c0_4 = arith.constant 0 : index
    %1 = vector.load %arg2[%c0_2, %c0_3, %c0_4] : memref<1x32x256xf32, #tpu.memory_space<vmem>>, vector<1x32x256xf32>
    %2 = arith.addf %0, %1 : vector<1x32x256xf32>
    %cst = arith.constant dense<0.000000e+00> : vector<1x32xf32>
    %3 = vector.multi_reduction <add>, %2, %cst [2] : vector<1x32x256xf32> to vector<1x32xf32>
    %4 = vector.shape_cast %3 : vector<1x32xf32> to vector<1x32x1xf32>
    %cst_5 = arith.constant 3.906250e-03 : f32
    %5 = vector.broadcast %cst_5 : f32 to vector<1x32x1xf32>
    %6 = arith.mulf %4, %5 : vector<1x32x1xf32>
    %7 = vector.shape_cast %6 : vector<1x32x1xf32> to vector<32x1xf32>
    %c0_6 = arith.constant 0 : index
    %c0_7 = arith.constant 0 : index
    %8 = vector.load %arg3[%c0_6, %c0_7] : memref<32x2xf32, #tpu.memory_space<vmem>>, vector<32x2xf32>
    %c0_8 = arith.constant 0 : index
    %c0_9 = arith.constant 0 : index
    %9 = vector.load %arg4[%c0_8, %c0_9] : memref<32x2xf32, #tpu.memory_space<vmem>>, vector<32x2xf32>
    %10 = vector.broadcast %7 : vector<32x1xf32> to vector<32x2xf32>
    %11 = arith.mulf %8, %10 : vector<32x2xf32>
    %cst_10 = arith.constant dense<0.000000e+00> : vector<2xf32>
    %12 = vector.multi_reduction <add>, %11, %cst_10 [0] : vector<32x2xf32> to vector<2xf32>
    %13 = vector.shape_cast %12 : vector<2xf32> to vector<1x2xf32>
    %cst_11 = arith.constant 0.000000e+00 : f32
    %14 = vector.broadcast %cst_11 : f32 to vector<1x2xf32>
    %15 = arith.maximumf %13, %14 : vector<1x2xf32>
    %16 = vector.broadcast %15 : vector<1x2xf32> to vector<32x2xf32>
    %17 = arith.mulf %9, %16 : vector<32x2xf32>
    %cst_12 = arith.constant dense<0.000000e+00> : vector<32xf32>
    %18 = vector.multi_reduction <add>, %17, %cst_12 [1] : vector<32x2xf32> to vector<32xf32>
    %19 = vector.shape_cast %18 : vector<32xf32> to vector<32x1xf32>
    %cst_13 = arith.constant 0.000000e+00 : f32
    %20 = vector.broadcast %cst_13 : f32 to vector<32x1xf32>
    %21 = arith.subf %20, %19 : vector<32x1xf32>
    %22 = math.exp %21 : vector<32x1xf32>
    %cst_14 = arith.constant 1.000000e+00 : f32
    %23 = vector.broadcast %cst_14 : f32 to vector<32x1xf32>
    %24 = arith.addf %23, %22 : vector<32x1xf32>
    %cst_15 = arith.constant 1.000000e+00 : f32
    %25 = vector.broadcast %cst_15 : f32 to vector<32x1xf32>
    %26 = arith.divf %25, %24 : vector<32x1xf32>
    %27 = vector.shape_cast %26 : vector<32x1xf32> to vector<1x32x1xf32>
    %28 = arith.subf %0, %1 : vector<1x32x256xf32>
    %29 = vector.broadcast %27 : vector<1x32x1xf32> to vector<1x32x256xf32>
    %30 = arith.mulf %28, %29 : vector<1x32x256xf32>
    %31 = arith.addf %1, %30 : vector<1x32x256xf32>
    %c0_16 = arith.constant 0 : index
    %c0_17 = arith.constant 0 : index
    %c0_18 = arith.constant 0 : index
    %32 = vector.load %arg5[%c0_16, %c0_17, %c0_18] : memref<1x32x256xf32, #tpu.memory_space<vmem>>, vector<1x32x256xf32>
    tpu.vector_store %arg5[%c0_16, %c0_17, %c0_18], %31 {strides = array<i32>} : memref<1x32x256xf32, #tpu.memory_space<vmem>>, vector<1x32x256xf32>,
    return
  }
  func.func @transform_0(%arg0: i32) -> (i32, i32, i32) {
    %c0_i32 = arith.constant 0 : i32
    %c0_i32_0 = arith.constant 0 : i32
    %c0_i32_1 = arith.constant 0 : i32
    return %arg0, %c0_i32, %c0_i32_0 : i32, i32, i32
  }
  func.func @transform_1(%arg0: i32) -> (i32, i32, i32) {
    %c0_i32 = arith.constant 0 : i32
    %c0_i32_0 = arith.constant 0 : i32
    %c0_i32_1 = arith.constant 0 : i32
    return %arg0, %c0_i32, %c0_i32_0 : i32, i32, i32
  }
  func.func @transform_2(%arg0: i32) -> (i32, i32) {
    %c0_i32 = arith.constant 0 : i32
    %c0_i32_0 = arith.constant 0 : i32
    %c0_i32_1 = arith.constant 0 : i32
    return %c0_i32, %c0_i32_0 : i32, i32
  }
  func.func @transform_3(%arg0: i32) -> (i32, i32) {
    %c0_i32 = arith.constant 0 : i32
    %c0_i32_0 = arith.constant 0 : i32
    %c0_i32_1 = arith.constant 0 : i32
    return %c0_i32, %c0_i32_0 : i32, i32
  }
  func.func @transform_4(%arg0: i32) -> (i32, i32, i32) {
    %c0_i32 = arith.constant 0 : i32
    %c0_i32_0 = arith.constant 0 : i32
    %c0_i32_1 = arith.constant 0 : i32
    return %arg0, %c0_i32, %c0_i32_0 : i32, i32, i32
  }
}

</mosaic_0001>

<bundles_post_ra>
// kernel: tpu_custom_call.1
= control target key start
LH: loop header
LB: loop body
LE: loop exit
PB: predicated region body
PF: predicated region fallthrough
CT: control target
= control target key end

     0   :  { %9 = vsyncpa [#allocation3], 0  ;;  %s1093_s0 = inlined_call_operand.hbm [shape: f32[2,32,256], index: 0, kind: input, shape index: {}]   ;;  %s1094_s1 = inlined_call_operand.hbm [shape: f32[2,32,256], index: 1, kind: input, shape index: {}]   ;;  %s1095_s2 = inlined_call_operand.vmem [shape: f32[32,2], index: 2, kind: input, shape index: {}]   ;;  %s1096_s3 = inlined_call_operand.vmem [shape: f32[32,2], index: 3, kind: input, shape index: {}]   ;;  %s1097_s4 = inlined_call_operand.hbm [shape: f32[2,32,256], index: 4, kind: output, shape index: {}]  }
   0x1   :  { %11 = vsyncpa [#allocation3 + $0x1], 0 }
   0x2   :  { %12 = vsyncpa [#allocation6], 0 }
   0x3   :  { %14 = vsyncpa [#allocation6 + $0x1], 0 }
   0x4   :  { %15 = vsyncpa [#allocation4], 0 }
   0x5   :  { %17 = vsyncpa [#allocation4 + $0x1], 0  ;;  %s761_s15 = smov 0   ;;  %s763_s16 = smov 0  }
   0x6   :  { %s765_s17 = smov 0   ;;  %s767_s18 = smov 0  }
   0x7 LB: > { %s782_s19 = sadd.s32 4294967295, %s727_s18   ;;  %s505_s20 = sadd.s32 4294967294, %s727_s18   ;;  %s727_s18 = sphi %s767_s18, %s1113_s18   ;;  %s723_s17 = sphi %s765_s17, %s1112_s17   ;;  %s719_s16 = sphi %s763_s16, %s1111_s16   ;;  %s715_s15 = sphi %s761_s15, %s1110_s15  }
   0x8   : > { %s786_s21 = sadd.s32 1, %s727_s18   ;;  %s30_s22 = sadd.s32 1, %s723_s17 }
   0x9   : > { %s27_s23 = ssub.s32 %s727_s18, %s786_s21  ;;  %p37_p0 = scmp.ne.s32.totalorder %s723_s17, %s719_s16 }
   0xa   : > { %p28_p1 = scmp.eq.s32.totalorder %s27_s23, 0  ;;  %p38_p2 = scmp.eq.s32.totalorder %s727_s18, 0 }
   0xb   : > { %p43_p3 = scmp.ne.s32.totalorder %s719_s16, %s715_s15  ;;  %p44_p4 = scmp.eq.s32.totalorder %s782_s19, 0 }
   0xc   : > { %s798_s24 = scalar_select %p28_p1, %s723_s17, %s30_s22  }
   0xd   : > { %p800_p5 = por %p38_p2, %p37_p0  ;;  %p804_p6 = por %p44_p4, %p43_p3 }
   0xe   : > { %p135_p7 = scmp.eq.s32.totalorder %s782_s19, 1  ;;  %p141_p8 = scmp.eq.s32.totalorder %s505_s20, 1 }
   0xf   : > { %s1101_s26 = scalar_select %p804_p6, 1, 0 }
  0x10   : > { %p543_p10 = scmp.lt.s32.totalorder %s727_s18, 2  ;;  %p811_p11 = por %p135_p7, %p37_p0 }
  0x11   : > { %p815_p12 = por %p141_p8, %p43_p3  ;;  %s820_s29 = sand.u32 1, %s723_s17  }
  0x12   : > { %s1102_s27 = scalar_select %p811_p11, 1, 0 }
  0x13   : > { %s1103_s28 = scalar_select %p815_p12, 1, 0 }
  0x14   : > { %s523_s30 = sshll.u32 %s727_s18, 10  ;;  %s508_s5 = sshll.u32 %s820_s29, 6 }
  0x15   : > { %s829_s8 = scalar_lea.hbm %s1093_s0, %s523_s30  ;;  %s171_s9 = scalar_lea.vmem [#allocation2], %s508_s5 }
  0x16   : > { %s178_s10 = sshll.u32 %s171_s9, 4  ;;  %p835_p13 = pnand %p543_p10, %p800_p5  ;;  %s839_s10 = int_to_ptr.vmem [resolvable:$true] %s178_s10 }
  0x17   : > { %s168_s12 = scalar_lea.sflag [#allocation3], %s820_s29  ;;  %s597_s13 = scalar_lea.hbm %s829_s8, 1024 }
  0x18   : > { %p598_p0 = scmp.ne.s32.totalorder %s829_s8, %s597_s13  ;;  %p599_p1 = pneg %p835_p13 }
  0x19   : > { %s602_s22 = scalar_lea.hbm %s1093_s0, 2048  ;;  %p603_p4 = scmp.lt.u32.totalorder %s829_s8, %s1093_s0 }
  0x1a   : > { %p600_p2 = pnand %p599_p1, %p598_p0  ;;  %p604_p5 = scmp.lt.u32.totalorder %s602_s22, %s597_s13 }
  0x1b   : > { %p606_p8 = scmp.lt.u32.totalorder %s597_s13, %s829_s8 }
  0x1c   : > { %p601_p3 = pneg %p600_p2  ;;  %p605_p7 = por %p604_p5, %p603_p4 }
  0x1e   : > { %p607_p10 = por %p606_p8, %p605_p7 }
  0x20   : > { %p608_p9 = pnand %p607_p10, %p601_p3 }
  0x22   : > { %611 = shalt.err (!%p608_p9)
}
  0x23   : > { %s612_s6 = scalar_lea.vmem %s839_s10, 1024  ;;  %s729_s7 = smov [#allocation2]  }
  0x24   : > { %p613_p0 = scmp.ne.s32.totalorder %s839_s10, %s612_s6  ;;  %s617_s9 = sshll.u32 %s729_s7, 4  ;;  %s618_s9 = int_to_ptr.vmem [resolvable:$false] %s617_s9 }
  0x25   : > { %s619_s14 = scalar_lea.vmem %s618_s9, 2048  ;;  %p620_p11 = scmp.lt.s32.totalorder %s839_s10, %s618_s9 }
  0x26   : > { %p615_p2 = pnand %p613_p0, %p599_p1  ;;  %p621_p4 = scmp.lt.s32.totalorder %s619_s14, %s612_s6 }
  0x28   : > { %p616_p12 = pneg %p615_p2  ;;  %p622_p5 = por %p621_p4, %p620_p11 }
  0x2a   : > { %p623_p7 = pnand %p622_p5, %p616_p12 }
  0x2c   : > { %626 = shalt.err (!%p623_p7)
}
  0x2d   : > { %s730_s13 = smov 256   ;;  %s731_s20 = smov 16  }
  0x2e   : > { %535 = dma.hbm_to_vmem [thread:$0]  (!%p835_p13), %s829_s8, 1024, %s839_s10, %s168_s12, %s730_s13, %s730_s13, %s731_s20  }
  0x2f   : > { %p514_p9 = scmp.ge.s32.totalorder %s727_s18, 1  ;;  %p207_p11 = scmp.lt.s32.totalorder %s727_s18, 3 }
  0x30   : > { %s883_s6 = scalar_lea.hbm %s1094_s1, %s523_s30  ;;  %s192_s7 = scalar_lea.vmem [#allocation5], %s508_s5 }
  0x31   : > { %p874_p12 = pnand %p514_p9, %p207_p11  ;;  %s199_s9 = sshll.u32 %s192_s7, 4  ;;  %s887_s9 = int_to_ptr.vmem [resolvable:$true] %s199_s9 }
  0x32   : > { %s189_s8 = scalar_lea.sflag [#allocation6], %s820_s29  ;;  %s627_s10 = scalar_lea.hbm %s883_s6, 1024 }
  0x33   : > { %p628_p3 = scmp.ne.s32.totalorder %s883_s6, %s627_s10  ;;  %s632_s30 = scalar_lea.hbm %s1094_s1, 2048 }
  0x34   : > { %p633_p0 = scmp.lt.u32.totalorder %s883_s6, %s1094_s1  ;;  %p634_p2 = scmp.lt.u32.totalorder %s632_s30, %s627_s10 }
  0x35   : > { %p630_p8 = pnand %p628_p3, %p599_p1  ;;  %p636_p5 = scmp.lt.u32.totalorder %s627_s10, %s883_s6 }
  0x36   : > { %p635_p4 = por %p634_p2, %p633_p0 }
  0x37   : > { %p631_p10 = pneg %p630_p8 }
  0x38   : > { %p637_p7 = por %p636_p5, %p635_p4 }
  0x3a   : > { %p638_p9 = pnand %p637_p7, %p631_p10 }
  0x3c   : > { %641 = shalt.err (!%p638_p9)
}
  0x3d   : > { %s642_s5 = scalar_lea.vmem %s887_s9, 1024  ;;  %s732_s7 = smov [#allocation5]  }
  0x3e   : > { %p643_p11 = scmp.ne.s32.totalorder %s887_s9, %s642_s5  ;;  %s647_s12 = sshll.u32 %s732_s7, 4  ;;  %s648_s12 = int_to_ptr.vmem [resolvable:$false] %s647_s12 }
  0x3f   : > { %s649_s14 = scalar_lea.vmem %s648_s12, 2048  ;;  %p650_p6 = scmp.lt.s32.totalorder %s887_s9, %s648_s12 }
  0x40   : > { %p645_p3 = pnand %p643_p11, %p599_p1  ;;  %p651_p0 = scmp.lt.s32.totalorder %s649_s14, %s642_s5 }
  0x42   : > { %p646_p8 = pneg %p645_p3  ;;  %p652_p2 = por %p651_p0, %p650_p6 }
  0x44   : > { %p653_p4 = pnand %p652_p2, %p646_p8 }
  0x46   : > { %656 = shalt.err (!%p653_p4)
}
  0x47   : > { %538 = dma.hbm_to_vmem [thread:$0]  (!%p835_p13), %s883_s6, 1024, %s887_s9, %s189_s8, %s730_s13, %s730_s13, %s731_s20  }
  0x48   : > { %211 = sbr.rel (%p874_p12) target bundleno = 456 (0x1c8), region = 36  ;;  %s921_s10 = sand.u32 (!%p874_p12), 1, %s719_s16  }
  0x49   : > { %s924_s30 = sshll.u32 (!%p874_p12), %s921_s10, 6  ;;  %s214_s11 = scalar_lea.sflag (!%p874_p12), [#allocation3], %s921_s10 }
  0x4a   : > { %s217_s23 = scalar_lea.vmem (!%p874_p12), [#allocation2], %s924_s30  ;;  %p1106_p6 = scmp.ne.s32.totalorder (!%p874_p12), %s1101_s26, 0 }
  0x4f   : > { %702 = dma.done.wait (%p1106_p6), %s214_s11, 1024  }
  0x50   : > { %704 = vsyncadd (%p1106_p6), %s214_s11, 4294966272  ;;  %s223_s29 = scalar_lea.sflag [#allocation6], %s921_s10  ;;  %s226_s13 = scalar_lea.vmem [#allocation5], %s924_s30 }
  0x51   : > { %706 = dma.done.wait (%p1106_p6), %s223_s29, 1024  }
  0x52   : > { %708 = vsyncadd (%p1106_p6), %s223_s29, 4294966272  ;;  %v938_v0 = vld [vmem:[%s217_s23] sm:$0xff]  ;;  %v940_v1 = vld [vmem:[%s217_s23 + $0x8] sm:$0xff]  ;;  %vm308_vm0 = vcmask 15360   ;;  %s525_s20 = sshll.u32 %s782_s19, 10  ;;  %s255_s22 = scalar_lea.vmem [#allocation7], %s924_s30 }
  0x53   : > { %v942_v2 = vld [vmem:[%s226_s13] sm:$0xff]  ;;  %v944_v3 = vld [vmem:[%s226_s13 + $0x8] sm:$0xff]  ;;  %v958_v10 = vld [vmem:[%s217_s23 + $0x10] sm:$0xff]  ;;  %s409_s6 = sshll.u32 %s255_s22, 4  ;;  %s1045_s19 = scalar_lea.hbm %s1097_s4, %s525_s20  ;;  %s1047_s6 = int_to_ptr.vmem [resolvable:$true] %s409_s6 }
  0x54   : > { %v272_v4 = vadd.f32 %v942_v2, %v938_v0  ;;  %v948_v5 = vld [vmem:[%s217_s23 + $0x20] sm:$0xff]  ;;  %v950_v6 = vld [vmem:[%s217_s23 + $0x28] sm:$0xff]  ;;  %v273_v7 = vadd.f32 %v944_v3, %v940_v1  ;;  %v964_v13 = vld [vmem:[%s217_s23 + $0x18] sm:$0xff]  ;;  %s396_s30 = scalar_lea.sflag [#allocation4], %s921_s10  ;;  %s657_s25 = scalar_lea.vmem %s1047_s6, 1024 }
  0x55   : > { %v954_v8 = vld [vmem:[%s226_s13 + $0x20] sm:$0xff]  ;;  %v956_v9 = vld [vmem:[%s226_s13 + $0x28] sm:$0xff]  ;;  %v966_v14 = vld [vmem:[%s226_s13 + $0x10] sm:$0xff]  ;;  %p658_p13 = scmp.ne.s32.totalorder %s1047_s6, %s657_s25  ;;  %p1107_p1 = scmp.ne.s32.totalorder %s1102_s27, 0 }
  0x56   : > { %v276_v11 = vadd.f32 %v954_v8, %v948_v5  ;;  %v277_v12 = vadd.f32 %v956_v9, %v950_v6  ;;  %v968_v15 = vld [vmem:[%s226_s13 + $0x18] sm:$0xff]  ;;  %v280_v16 = vadd.f32 %v273_v7, %v272_v4  ;;  %v274_v17 = vadd.f32 %v966_v14, %v958_v10  ;;  %v974_v19 = vld [vmem:[%s217_s23 + $0x30] sm:$0xff]  ;;  %v296_v31 = vld [vmem:[%s1095_s2] sm:$0xff]  ;;  %s733_s5 = smov [#allocation7]  }
  0x57   : > { %v275_v18 = vadd.f32 %v968_v15, %v964_v13  ;;  %v976_v20 = vld [vmem:[%s217_s23 + $0x38] sm:$0xff]  ;;  %v978_v21 = vld [vmem:[%s226_s13 + $0x30] sm:$0xff]  ;;  %v297_v34 = vld [vmem:[%s1095_s2 + $0x8] sm:$0xff]  ;;  %p659_p12 = pnand %p658_p13, %p1107_p1  ;;  %s661_s7 = sshll.u32 %s733_s5, 4  ;;  %s662_s7 = int_to_ptr.vmem [resolvable:$false] %s661_s7 }
  0x58   : > { %v286_v22 = vadd.f32 %v277_v12, %v276_v11  ;;  %v980_v23 = vld [vmem:[%s226_s13 + $0x38] sm:$0xff]  ;;  %v278_v24 = vadd.f32 %v978_v21, %v974_v19  ;;  %281 = vadd.xlane.f32.xlu0 %v280_v16  ;;  %v298_v33 = vld [vmem:[%s1095_s2 + $0x10] sm:$0xff]  ;;  %v301_v57 = vld [vmem:[%s1096_s3 + $0x8] sm:$0xff]  ;;  %s663_s12 = scalar_lea.vmem %s662_s7, 2048  ;;  %p664_p5 = scmp.lt.s32.totalorder %s1047_s6, %s662_s7 }
  0x59   : > { %v283_v25 = vadd.f32 %v275_v18, %v274_v17  ;;  %v279_v26 = vadd.f32 %v980_v23, %v976_v20  ;;  %v299_v38 = vld [vmem:[%s1095_s2 + $0x18] sm:$0xff]  ;;  %v300_v58 = vld [vmem:[%s1096_s3] sm:$0xff]  ;;  %v302_v61 = vld [vmem:[%s1096_s3 + $0x10] sm:$0xff]  ;;  %p660_p10 = pneg %p659_p12  ;;  %p665_p7 = scmp.lt.s32.totalorder %s663_s12, %s657_s25 }
  0x5a   : > { %287 = vadd.xlane.f32.xlu1 %v286_v22  ;;  %v303_v60 = vld [vmem:[%s1096_s3 + $0x18] sm:$0xff] }
  0x5b   : > { %v289_v27 = vadd.f32 %v279_v26, %v278_v24  ;;  %p666_p9 = por %p665_p7, %p664_p5 }
  0x5c   : > { %284 = vadd.xlane.f32.xlu0 %v283_v25 }
  0x5d   : > { %p667_p11 = pnand %p666_p9, %p660_p10 }
  0x5e   : > { %290 = vadd.xlane.f32.xlu1 %v289_v27 }
  0xe5   : > { %v282_v28 = vpop.xlane.xlu0 %281 }
  0xe6   : > { %v292_v29 = vmul.f32 0.00390625, %v282_v28 }
  0xe7   : > { %v288_v30 = vpop.xlane.xlu1 %287 }
  0xe8   : > { %v294_v32 = vmul.f32 0.00390625, %v288_v30  ;;  %v304_v36 = vmul.f32 %v296_v31, %v292_v29 }
  0xe9   : > { %v285_v35 = vpop.xlane.xlu0 %284 }
  0xea   : > { %v293_v37 = vmul.f32 0.00390625, %v285_v35  ;;  %v306_v41 = vmul.f32 %v298_v33, %v294_v32  ;;  %v309_v44 = vsel %vm308_vm0, %v304_v36, 0.0 }
  0xeb   : > { %v291_v39 = vpop.xlane.xlu1 %290 }
  0xec   : > { %v295_v40 = vmul.f32 0.00390625, %v291_v39  ;;  %v305_v42 = vmul.f32 %v297_v34, %v293_v37  ;;  %v312_v47 = vsel %vm308_vm0, %v306_v41, 0.0 }
  0xee   : > { %v307_v43 = vmul.f32 %v299_v38, %v295_v40  ;;  %v310_v45 = vsel %vm308_vm0, %v305_v42, 0.0  ;;  %v365_v42 = vsub.f32 %v958_v10, %v966_v14 }
  0xef   : > { %v311_v46 = vadd.f32 %v310_v45, %v309_v44  ;;  %v363_v44 = vsub.f32 %v938_v0, %v942_v2  ;;  %v364_v45 = vsub.f32 %v940_v1, %v944_v3  ;;  %v368_v0 = vsub.f32 %v950_v6, %v956_v9 }
  0xf0   : > { %v314_v48 = vsel %vm308_vm0, %v307_v43, 0.0  ;;  %v366_v43 = vsub.f32 %v964_v13, %v968_v15  ;;  %v367_v13 = vsub.f32 %v948_v5, %v954_v8 }
  0xf1   : > { %v313_v49 = vadd.f32 %v312_v47, %v311_v46 }
  0xf3   : > { %v315_v50 = vadd.f32 %v314_v48, %v313_v49  ;;  %v369_v48 = vsub.f32 %v974_v19, %v978_v21  ;;  %v370_v49 = vsub.f32 %v976_v20, %v980_v23 }
  0xf5   : > { %v316_v51 = vrot.slane %v315_v50, 4 }
  0xf7   : > { %v317_v52 = vadd.f32 %v316_v51, %v315_v50 }
  0xf9   : > { %v318_v53 = vrot.slane %v317_v52, 2 }
  0xfb   : > { %v319_v54 = vadd.f32 %v318_v53, %v317_v52 }
  0xfd   : > { %v320_v55 = vrot.slane %v319_v54, 1 }
  0xff   : > { %v321_v56 = vadd.f32 %v320_v55, %v319_v54 }
 0x101   : > { %v322_v59 = vmax.f32 %v321_v56, 0.0 }
 0x103   : > { %v324_v62 = vmul.f32 %v322_v59, %v301_v57  ;;  %v323_v63 = vmul.f32 %v322_v59, %v300_v58  ;;  %v326_v11 = vmul.f32 %v322_v59, %v303_v60  ;;  %v325_v12 = vmul.f32 %v322_v59, %v302_v61 }
 0x105   : > { %v330_v4 = vsel %vm308_vm0, %v324_v62, 0.0  ;;  %v327_v7 = vsel %vm308_vm0, %v323_v63, 0.0  ;;  %v336_v16 = vsel %vm308_vm0, %v326_v11, 0.0  ;;  %v333_v17 = vsel %vm308_vm0, %v325_v12, 0.0 }
 0x106   : > { %331 = vadd.xlane.f32.xlu1 %v330_v4  ;;  %328 = vadd.xlane.f32.xlu0 %v327_v7 }
 0x10a   : > { %337 = vadd.xlane.f32.xlu1 %v336_v16  ;;  %334 = vadd.xlane.f32.xlu0 %v333_v17 }
 0x193   : > { %v332_v18 = vpop.xlane.xlu1 %331  ;;  %v329_v22 = vpop.xlane.xlu0 %328 }
 0x194   : > { %v340_v24 = vsub.f32 0.0, %v332_v18  ;;  %v339_v25 = vsub.f32 0.0, %v329_v22 }
 0x196   : > { %v345_v26 = vmul.f32 1.442695, %v340_v24  ;;  %v343_v27 = vmul.f32 1.442695, %v339_v25 }
 0x197   : > { %v338_v28 = vpop.xlane.xlu1 %337  ;;  %v335_v29 = vpop.xlane.xlu0 %334 }
 0x198   : > { %581 = vpow2.f32 %v345_v26  ;;  %v342_v30 = vsub.f32 0.0, %v338_v28  ;;  %v341_v31 = vsub.f32 0.0, %v335_v29 }
 0x199   : > { %583 = vpow2.f32 %v343_v27 }
 0x19a   : > { %v349_v32 = vmul.f32 1.442695, %v342_v30  ;;  %v347_v33 = vmul.f32 1.442695, %v341_v31 }
 0x19c   : > { %585 = vpow2.f32 %v349_v32 }
 0x19d   : > { %587 = vpow2.f32 %v347_v33 }
 0x1a2   : > { %v582_v34 = vpop.eup %581 }
 0x1a3   : > { %v584_v35 = vpop.eup %583  ;;  %v352_v36 = vadd.f32 1.0, %v582_v34 }
 0x1a4   : > { %v351_v37 = vadd.f32 1.0, %v584_v35 }
 0x1a5   : > { %589 = vrcp.f32 %v352_v36 }
 0x1a6   : > { %v586_v38 = vpop.eup %585  ;;  %591 = vrcp.f32 %v351_v37 }
 0x1a7   : > { %v588_v39 = vpop.eup %587  ;;  %v354_v40 = vadd.f32 1.0, %v586_v38 }
 0x1a8   : > { %v353_v41 = vadd.f32 1.0, %v588_v39 }
 0x1a9   : > { %593 = vrcp.f32 %v354_v40 }
 0x1aa   : > { %595 = vrcp.f32 %v353_v41 }
 0x1af   : > { %v590_v46 = vpop.eup %589 }
 0x1b0   : > { %v592_v47 = vpop.eup %591  ;;  %v373_v10 = vmul.f32 %v590_v46, %v365_v42  ;;  %v374_v50 = vmul.f32 %v590_v46, %v366_v43 }
 0x1b1   : > { %v371_v51 = vmul.f32 %v592_v47, %v363_v44  ;;  %v372_v1 = vmul.f32 %v592_v47, %v364_v45 }
 0x1b2   : > { %v381_v52 = vadd.f32 %v373_v10, %v966_v14  ;;  %v382_v53 = vadd.f32 %v374_v50, %v968_v15 }
 0x1b3   : > { %v594_v54 = vpop.eup %593  ;;  %v379_v19 = vadd.f32 %v371_v51, %v942_v2  ;;  %v380_v55 = vadd.f32 %v372_v1, %v944_v3 }
 0x1b4   : > { %v596_v20 = vpop.eup %595  ;;  %389 = vst [vmem:[%s255_s22 + $0x10] sm:$0xff] %v381_v52  ;;  %390 = vst [vmem:[%s255_s22 + $0x18] sm:$0xff] %v382_v53  ;;  %v377_v5 = vmul.f32 %v594_v54, %v369_v48  ;;  %v378_v6 = vmul.f32 %v594_v54, %v370_v49 }
 0x1b5   : > { %387 = vst [vmem:[%s255_s22] sm:$0xff] %v379_v19  ;;  %388 = vst [vmem:[%s255_s22 + $0x8] sm:$0xff] %v380_v55  ;;  %v375_v14 = vmul.f32 %v596_v20, %v367_v13  ;;  %v376_v56 = vmul.f32 %v596_v20, %v368_v0 }
 0x1b6   : > { %v385_v15 = vadd.f32 %v377_v5, %v978_v21  ;;  %v386_v2 = vadd.f32 %v378_v6, %v980_v23 }
 0x1b7   : > { %v383_v3 = vadd.f32 %v375_v14, %v954_v8  ;;  %v384_v57 = vadd.f32 %v376_v56, %v956_v9 }
 0x1b8   : > { %393 = vst [vmem:[%s255_s22 + $0x30] sm:$0xff] %v385_v15  ;;  %394 = vst [vmem:[%s255_s22 + $0x38] sm:$0xff] %v386_v2 }
 0x1b9   : > { %391 = vst [vmem:[%s255_s22 + $0x20] sm:$0xff] %v383_v3  ;;  %392 = vst [vmem:[%s255_s22 + $0x28] sm:$0xff] %v384_v57 }
 0x1ba   : > { %670 = shalt.err (!%p667_p11)
}
 0x1bb   : > { %s671_s14 = scalar_lea.hbm %s1045_s19, 1024  ;;  %s675_s29 = scalar_lea.hbm %s1097_s4, 2048 }
 0x1bc   : > { %p672_p3 = scmp.ne.s32.totalorder %s1045_s19, %s671_s14  ;;  %p676_p2 = scmp.lt.u32.totalorder %s1045_s19, %s1097_s4 }
 0x1bd   : > { %p677_p4 = scmp.lt.u32.totalorder %s675_s29, %s671_s14  ;;  %p679_p13 = scmp.lt.u32.totalorder %s671_s14, %s1045_s19 }
 0x1be   : > { %p673_p8 = pnand %p672_p3, %p1107_p1 }
 0x1bf   : > { %p678_p6 = por %p677_p4, %p676_p2 }
 0x1c0   : > { %p674_p0 = pneg %p673_p8 }
 0x1c1   : > { %p680_p12 = por %p679_p13, %p678_p6 }
 0x1c3   : > { %p681_p10 = pnand %p680_p12, %p674_p0 }
 0x1c5   : > { %684 = shalt.err (!%p681_p10)
}
 0x1c6   : > { %s734_s20 = smov 256   ;;  %s735_s22 = smov 16  }
 0x1c7   : > { %530 = dma.vmem_to_hbm [thread:$0]  (%p1107_p1), %s1047_s6, 1024, %s1045_s19, %s396_s30, %s734_s20, %s734_s20, %s735_s22  }
 0x1c8 PF: > { %s424_s9 = sand.u32 1, %s715_s15   ;;  %p1108_p5 = scmp.ne.s32.totalorder %s1103_s28, 0 }
 0x1c9   : > { %p1109_p7 = scmp.ge.s32.totalorder %s727_s18, 2  ;;  %s425_s8 = scalar_lea.sflag [#allocation4], %s424_s9 }
 0x1cb   : > { %p540_p9 = pnand %p1109_p7, %p1108_p5 }
 0x1cd   : > { %710 = dma.done.wait (!%p540_p9), %s425_s8, 1024  }
 0x1ce   : > { %712 = vsyncadd (!%p540_p9), %s425_s8, 4294966272  ;;  %p20_p11 = scmp.ge.s32.totalorder %s786_s21, 4   ;;  %s1110_s15 = smov %s719_s16 }
 0x1cf   : > { %s1111_s16 = smov %s723_s17  ;;  %s1112_s17 = smov %s798_s24 }
 0x1d0   : > { %s1113_s18 = smov %s786_s21  ;;  %22 = sbr.rel (!%p20_p11) target bundleno = 7 (0x7), region = 94 }
 0x1d7   :  { %430 = vsyncpa [#allocation3], 1 }
 0x1d8   :  { %432 = vsyncpa [#allocation3 + $0x1], 1 }
 0x1d9   :  { %433 = vsyncpa [#allocation6], 1 }
 0x1da   :  { %435 = vsyncpa [#allocation6 + $0x1], 1 }
 0x1db   :  { %436 = vsyncpa [#allocation4], 1 }
 0x1dc   :  { %438 = vsyncpa [#allocation4 + $0x1], 1 }

</bundles_post_ra>
